<compile_context>
chip_gen: v6e
topology: v6e:2x2x1
jax: 0.10.0
libtpu: 0.0.40
codegen_flags: <defaults>
</compile_context>

<pallas_src>
import functools

import jax
import jax.numpy as jnp
from jax.experimental import pallas as pl
from jax.experimental.pallas import tpu as pltpu


# ----------------------------- Pallas kernel -------------------------------

def _matmul_bias_act_kernel(x_ref, w_ref, b_ref, o_ref, acc_ref, *,
                            activation, negative_slope):
    """One (tm, tn) output tile; accumulates over the K grid axis."""
    @pl.when(pl.program_id(2) == 0)
    def _():
        acc_ref[...] = jnp.zeros_like(acc_ref)

    acc_ref[...] += jnp.dot(x_ref[...], w_ref[...],
                            preferred_element_type=jnp.float32)

    @pl.when(pl.program_id(2) == pl.num_programs(2) - 1)
    def _():
        acc = acc_ref[...] + b_ref[...]          # (1, tn) broadcasts over (tm, tn)
        if activation == "leaky_relu":
            acc = jnp.where(acc >= 0, acc, negative_slope * acc)
        o_ref[...] = acc.astype(o_ref.dtype)


def _round_up(a, m):
    return ((a + m - 1) // m) * m


def pallas_linear(x, w, b, *, activation=None, negative_slope=0.01,
                  tm_max=512, tn_max=512, tk_max=512):
    """y = act(x @ w + b).  x:(M,K) w:(K,N) b:(N,) -> (M,N), f32 accumulation."""
    M, K = x.shape
    Kw, N = w.shape
    assert Kw == K and b.shape == (N,)

    # Tile sizes: sublane-aligned M, lane-aligned (128) N and K.
    tm = min(tm_max, _round_up(M, 8))
    tn = min(tn_max, _round_up(N, 128))
    tk = min(tk_max, _round_up(K, 128))
    Mp, Kp, Np = _round_up(M, tm), _round_up(K, tk), _round_up(N, tn)

    # Zero-pad (zero rows/cols contribute nothing; sliced off afterwards).
    xp = jnp.pad(x, ((0, Mp - M), (0, Kp - K)))
    wp = jnp.pad(w, ((0, Kp - K), (0, Np - N)))
    bp = jnp.pad(b, (0, Np - N)).reshape(1, Np)

    grid = (Mp // tm, Np // tn, Kp // tk)
    cost = pl.CostEstimate(
        flops=2 * Mp * Kp * Np,
        transcendentals=0,
        bytes_accessed=4 * (Mp * Kp + Kp * Np + Np + Mp * Np),
    )

    out = pl.pallas_call(
        functools.partial(_matmul_bias_act_kernel,
                          activation=activation,
                          negative_slope=negative_slope),
        out_shape=jax.ShapeDtypeStruct((Mp, Np), x.dtype),
        grid_spec=pltpu.PrefetchScalarGridSpec(
            num_scalar_prefetch=0,
            grid=grid,
            in_specs=[
                pl.BlockSpec((tm, tk), lambda i, j, k: (i, k)),   # activations
                pl.BlockSpec((tk, tn), lambda i, j, k: (k, j)),   # weights
                pl.BlockSpec((1, tn), lambda i, j, k: (0, j)),    # bias
            ],
            out_specs=pl.BlockSpec((tm, tn), lambda i, j, k: (i, j)),
            scratch_shapes=[pltpu.VMEM((tm, tn), jnp.float32)],
        ),
        compiler_params=pltpu.CompilerParams(
            dimension_semantics=("parallel", "parallel", "arbitrary")),
        cost_estimate=cost,
    )(xp, wp, bp)

    return out[:M, :N]


# --------------------------- model (plain-JAX glue) -------------------------

def init_encoder_params(key, in_features, linear_layers, latent_dim):
    """Parameters for the reconstructed LinearNLayerEncoder.

    Weights stored as (in, out) so forward is x @ W + b."""
    dims = [in_features] + list(linear_layers) + [latent_dim]
    params = []
    for i in range(len(dims) - 1):
        key, wk, bk = jax.random.split(key, 3)
        fan_in = dims[i]
        w = jax.random.normal(wk, (dims[i], dims[i + 1]), jnp.float32)
        w = w * (1.0 / fan_in) ** 0.5
        bvec = jax.random.normal(bk, (dims[i + 1],), jnp.float32) * 0.01
        params.append((w, bvec))
    return params


def invertible_encoding_head_forward(x, params, *, pnultimate_x=False,
                                     negative_slope=0.01):
    """Forward pass matching InvertibleEncodingHead.forward.

    Returns (latent, penultimate_or_None).  x: (N, ...) is flattened first."""
    n_batch = x.shape[0]
    h = x.reshape(n_batch, -1).astype(jnp.float32)   # nn.Flatten() (+ f32 instead of f64)
    penultimate = None
    n_layers = len(params)
    for idx, (w, b) in enumerate(params):
        is_last = idx == n_layers - 1
        if pnultimate_x and is_last:
            penultimate = h
        h = pallas_linear(h, w, b,
                          activation=None if is_last else "leaky_relu",
                          negative_slope=negative_slope)
    if pnultimate_x:
        return h, penultimate
    return h, None


def reference_forward(x, params, *, pnultimate_x=False, negative_slope=0.01):
    """Pure-JAX reference for correctness checking."""
    n_batch = x.shape[0]
    h = x.reshape(n_batch, -1).astype(jnp.float32)
    penultimate = None
    n_layers = len(params)
    for idx, (w, b) in enumerate(params):
        is_last = idx == n_layers - 1
        if pnultimate_x and is_last:
            penultimate = h
        h = h @ w + b
        if not is_last:
            h = jnp.where(h >= 0, h, negative_slope * h)
    return h, (penultimate if pnultimate_x else None)


# ---------------------------------- test ------------------------------------

if __name__ == "__main__":
    # mparams = {'enc_args': {'linear_layers': [256, 64]}, 'latent_dim': 32}
    key = jax.random.PRNGKey(0)
    key, xk, pk = jax.random.split(key, 3)

    batch = 2
    x = jax.random.normal(xk, (batch, 4, 16, 16), jnp.float32)   # flattens to 1024 features
    in_features = 4 * 16 * 16
    linear_layers = [256, 64]
    latent_dim = 32

    params = init_encoder_params(pk, in_features, linear_layers, latent_dim)

    # pnultimate_x=True path: returns (latent, penultimate_activations)
    out, pen = invertible_encoding_head_forward(x, params, pnultimate_x=True)
    out = jax.block_until_ready(out)
    pen = jax.block_until_ready(pen)

    ref_out, ref_pen = reference_forward(x, params, pnultimate_x=True)
    ref_out = jax.block_until_ready(ref_out)

    assert out.shape == (batch, latent_dim), out.shape
    assert pen.shape == (batch, linear_layers[-1]), pen.shape
    assert jnp.allclose(out, ref_out, atol=1e-4, rtol=1e-4), \
        float(jnp.max(jnp.abs(out - ref_out)))
    assert jnp.allclose(pen, ref_pen, atol=1e-4, rtol=1e-4), \
        float(jnp.max(jnp.abs(pen - ref_pen)))

    # default path: returns (latent, None)
    out2, none2 = invertible_encoding_head_forward(x, params, pnultimate_x=False)
    out2 = jax.block_until_ready(out2)
    assert none2 is None
    assert jnp.allclose(out2, ref_out, atol=1e-4, rtol=1e-4)

    print("KERNEL_OK")
</pallas_src>

<mosaic_0001>
module attributes {stable_mosaic.version = 11 : i64} {
  func.func @_matmul_bias_act_kernel(%arg0: i32, %arg1: i32, %arg2: i32, %arg3: memref<8x512xf32, #tpu.memory_space<vmem>>, %arg4: memref<512x256xf32, #tpu.memory_space<vmem>>, %arg5: memref<1x256xf32, #tpu.memory_space<vmem>>, %arg6: memref<8x256xf32, #tpu.memory_space<vmem>>, %arg7: memref<8x256xf32, #tpu.memory_space<vmem>>) attributes {dimension_semantics = [#tpu.dimension_semantics<parallel>, #tpu.dimension_semantics<parallel>, #tpu.dimension_semantics<arbitrary>], iteration_bounds = array<i64: 1, 1, 2>, scalar_prefetch = 0 : i64, scratch_operands = 1 : i64, tpu.core_type = #tpu.core_type<tc>, window_params = [{transform_indices = @transform_0, window_bounds = array<i64: 8, 512>}, {transform_indices = @transform_1, window_bounds = array<i64: 512, 256>}, {transform_indices = @transform_2, window_bounds = array<i64: 1, 256>}, {transform_indices = @transform_3, window_bounds = array<i64: 8, 256>}]} {
    %c0_i32 = arith.constant 0 : i32
    %0 = arith.cmpi eq, %arg2, %c0_i32 : i32
    %1 = arith.extui %0 : i1 to i32
    %c0_i32_0 = arith.constant 0 : i32
    %2 = arith.cmpi ne, %1, %c0_i32_0 : i32
    scf.if %2 {
      %cst_9 = arith.constant 0.000000e+00 : f32
      %12 = vector.broadcast %cst_9 : f32 to vector<8x256xf32>
      %c0_10 = arith.constant 0 : index
      %c0_11 = arith.constant 0 : index
      %13 = vector.load %arg7[%c0_10, %c0_11] : memref<8x256xf32, #tpu.memory_space<vmem>>, vector<8x256xf32>
      tpu.vector_store %arg7[%c0_10, %c0_11], %12 {strides = array<i32>} : memref<8x256xf32, #tpu.memory_space<vmem>>, vector<8x256xf32>,
    } else {
    }
    %c0 = arith.constant 0 : index
    %c0_1 = arith.constant 0 : index
    %3 = vector.load %arg7[%c0, %c0_1] : memref<8x256xf32, #tpu.memory_space<vmem>>, vector<8x256xf32>
    %c0_2 = arith.constant 0 : index
    %c0_3 = arith.constant 0 : index
    %4 = vector.load %arg3[%c0_2, %c0_3] : memref<8x512xf32, #tpu.memory_space<vmem>>, vector<8x512xf32>
    %c0_4 = arith.constant 0 : index
    %c0_5 = arith.constant 0 : index
    %5 = vector.load %arg4[%c0_4, %c0_5] : memref<512x256xf32, #tpu.memory_space<vmem>>, vector<512x256xf32>
    %cst = arith.constant dense<0.000000e+00> : vector<8x256xf32>
    %6 = tpu.matmul %4, %5, %cst {dimension_numbers = #tpu.dot_dimension_numbers<[1], [0], [0], [1], [0, 0, 1, 1], [], []>} : vector<8x512xf32>, vector<512x256xf32>, vector<8x256xf32> -> vector<8x256xf32>
    %7 = arith.addf %3, %6 : vector<8x256xf32>
    %c0_6 = arith.constant 0 : index
    %c0_7 = arith.constant 0 : index
    %8 = vector.load %arg7[%c0_6, %c0_7] : memref<8x256xf32, #tpu.memory_space<vmem>>, vector<8x256xf32>
    tpu.vector_store %arg7[%c0_6, %c0_7], %7 {strides = array<i32>} : memref<8x256xf32, #tpu.memory_space<vmem>>, vector<8x256xf32>,
    %c1_i32 = arith.constant 1 : i32
    %9 = arith.cmpi eq, %arg2, %c1_i32 : i32
    %10 = arith.extui %9 : i1 to i32
    %c0_i32_8 = arith.constant 0 : i32
    %11 = arith.cmpi ne, %10, %c0_i32_8 : i32
    scf.if %11 {
      %c0_9 = arith.constant 0 : index
      %c0_10 = arith.constant 0 : index
      %12 = vector.load %arg7[%c0_9, %c0_10] : memref<8x256xf32, #tpu.memory_space<vmem>>, vector<8x256xf32>
      %c0_11 = arith.constant 0 : index
      %c0_12 = arith.constant 0 : index
      %13 = vector.load %arg5[%c0_11, %c0_12] : memref<1x256xf32, #tpu.memory_space<vmem>>, vector<1x256xf32>
      %14 = vector.broadcast %13 : vector<1x256xf32> to vector<8x256xf32>
      %15 = arith.addf %12, %14 : vector<8x256xf32>
      %cst_13 = arith.constant 0.000000e+00 : f32
      %16 = vector.broadcast %cst_13 : f32 to vector<8x256xf32>
      %17 = arith.cmpf oge, %15, %16 : vector<8x256xf32>
      %cst_14 = arith.constant 0.00999999977 : f32
      %18 = vector.broadcast %cst_14 : f32 to vector<8x256xf32>
      %19 = arith.mulf %18, %15 : vector<8x256xf32>
      %20 = arith.select %17, %15, %19 : vector<8x256xi1>, vector<8x256xf32>
      %c0_15 = arith.constant 0 : index
      %c0_16 = arith.constant 0 : index
      %21 = vector.load %arg6[%c0_15, %c0_16] : memref<8x256xf32, #tpu.memory_space<vmem>>, vector<8x256xf32>
      tpu.vector_store %arg6[%c0_15, %c0_16], %20 {strides = array<i32>} : memref<8x256xf32, #tpu.memory_space<vmem>>, vector<8x256xf32>,
    } else {
    }
    return
  }
  func.func @transform_0(%arg0: i32, %arg1: i32, %arg2: i32) -> (i32, i32) {
    %c0_i32 = arith.constant 0 : i32
    return %arg0, %arg2 : i32, i32
  }
  func.func @transform_1(%arg0: i32, %arg1: i32, %arg2: i32) -> (i32, i32) {
    %c0_i32 = arith.constant 0 : i32
    return %arg2, %arg1 : i32, i32
  }
  func.func @transform_2(%arg0: i32, %arg1: i32, %arg2: i32) -> (i32, i32) {
    %c0_i32 = arith.constant 0 : i32
    %c0_i32_0 = arith.constant 0 : i32
    return %c0_i32, %arg1 : i32, i32
  }
  func.func @transform_3(%arg0: i32, %arg1: i32, %arg2: i32) -> (i32, i32) {
    %c0_i32 = arith.constant 0 : i32
    return %arg0, %arg1 : i32, i32
  }
}

</mosaic_0001>

<bundles_post_ra>
// kernel: tpu_custom_call.1
= control target key start
LH: loop header
LB: loop body
LE: loop exit
PB: predicated region body
PF: predicated region fallthrough
CT: control target
= control target key end

     0   :  { %8 = vsyncpa [#allocation4], 0  ;;  %s1249_s0 = inlined_call_operand.hbm [shape: f32[8,1024], index: 0, kind: input, shape index: {}]   ;;  %s1250_s1 = inlined_call_operand.hbm [shape: f32[1024,256], index: 1, kind: input, shape index: {}]   ;;  %s1251_s2 = inlined_call_operand.vmem [shape: f32[1,256], index: 2, kind: input, shape index: {}]   ;;  %s1252_s3 = inlined_call_operand.hbm [shape: f32[8,256], index: 3, kind: output, shape index: {}]  }
   0x1   :  { %10 = vsyncpa [#allocation4 + $0x1], 0 }
   0x2   :  { %11 = vsyncpa [#allocation7], 0 }
   0x3   :  { %13 = vsyncpa [#allocation7 + $0x1], 0 }
   0x4   :  { %14 = vsyncpa [#allocation5], 0  ;;  %s966_s12 = smov 0   ;;  %s968_s13 = smov 0  }
   0x5   :  { %s970_s14 = smov 0   ;;  %s972_s15 = smov 0  }
   0x6   :  { %s974_s16 = smov 0   ;;  %s976_s17 = smov 0  }
   0x7 LB: > { %s707_s18 = sadd.s32 4294967295, %s938_s17   ;;  %s32_s19 = sadd.s32 1, %s934_s16  ;;  %s938_s17 = sphi %s976_s17, %s20_s17   ;;  %s934_s16 = sphi %s974_s16, %s1262_s16   ;;  %s930_s15 = sphi %s972_s15, %s1261_s15   ;;  %s926_s14 = sphi %s970_s14, %s1260_s14   ;;  %s922_s13 = sphi %s968_s13, %s1259_s13   ;;  %s918_s12 = sphi %s966_s12, %s1258_s12  }
   0x8   : > { %p33_p0 = scmp.ge.s32.totalorder %s32_s19, 2  ;;  %s48_s20 = sadd.s32 1, %s926_s14 }
   0x9   : > { %p55_p1 = scmp.ne.s32.totalorder %s926_s14, %s922_s13  ;;  %p56_p2 = scmp.eq.s32.totalorder %s938_s17, 0 }
   0xa   : > { %s1264_s19 = smov (%p33_p0, %s32_s19), 0  ;;  %p61_p4 = scmp.ne.s32.totalorder %s922_s13, %s918_s12 }
   0xb   : > { %p1002_p3 = por %p56_p2, %p55_p1  ;;  %s44_s22 = ssub.s32 %s934_s16, %s1264_s19 }
   0xc   : > { %p62_p5 = scmp.eq.s32.totalorder %s707_s18, 0  ;;  %p46_p6 = scmp.eq.s32.totalorder %s44_s22, 0 }
   0xd   : > { %p745_p8 = scmp.lt.s32.totalorder %s938_s17, 2  ;;  %s1020_s25 = sand.u32 1, %s926_s14  }
   0xe   : > { %p1011_p7 = por %p62_p5, %p61_p4  ;;  %s727_s26 = sshll.u32 %s934_s16, 9 }
   0xf   : > { %s1017_s24 = scalar_select %p46_p6, %s926_s14, %s48_s20  }
  0x10   : > { %s711_s27 = sshll.u32 %s1020_s25, 5  ;;  %s187_s30 = scalar_lea.hbm %s1249_s0, %s727_s26 }
  0x11   : > { %s179_s4 = scalar_lea.vmem [#allocation3], %s711_s27  ;;  %p1029_p9 = pnand %p745_p8, %p1002_p3 }
  0x12   : > { %s189_s5 = sshll.u32 %s179_s4, 4  ;;  %p718_p10 = scmp.ge.s32.totalorder %s938_s17, 1  ;;  %s190_s5 = int_to_ptr.vmem [resolvable:$true] %s189_s5 }
  0x13   : > { %p218_p11 = scmp.lt.s32.totalorder %s938_s17, 3  ;;  %s176_s7 = scalar_lea.sflag [#allocation4], %s1020_s25 }
  0x14   : > { %p802_p12 = pneg %p1029_p9  ;;  %s813_s8 = scalar_lea.vmem %s190_s5, 512 }
  0x15   : > { %p814_p13 = scmp.ne.s32.totalorder %s190_s5, %s813_s8  ;;  %s940_s9 = smov [#allocation3]  }
  0x16   : > { %s818_s10 = sshll.u32 %s940_s9, 4  ;;  %s819_s10 = int_to_ptr.vmem [resolvable:$false] %s818_s10 }
  0x17   : > { %p816_p0 = pnand %p814_p13, %p802_p12  ;;  %s820_s11 = scalar_lea.vmem %s819_s10, 1024 }
  0x18   : > { %p821_p2 = scmp.lt.s32.totalorder %s190_s5, %s819_s10  ;;  %p822_p3 = scmp.lt.s32.totalorder %s820_s11, %s813_s8 }
  0x19   : > { %p817_p1 = pneg %p816_p0 }
  0x1a   : > { %p823_p4 = por %p822_p3, %p821_p2 }
  0x1c   : > { %p824_p5 = pnand %p823_p4, %p817_p1 }
  0x1e   : > { %827 = shalt.err (!%p824_p5)
}
  0x1f   : > { %741 = dma.hbm_to_vmem [thread:$0]  (!%p1029_p9), %s187_s30, 512, %s190_s5, %s176_s7  }
  0x20   : > { %p1047_p6 = pnand %p718_p10, %p218_p11  ;;  %s714_s20 = sshll.u32 %s1020_s25, 10 }
  0x21   : > { %s729_s21 = sshll.u32 %s934_s16, 14  ;;  %s200_s28 = scalar_lea.vmem [#allocation6], %s714_s20 }
  0x22   : > { %s209_s27 = scalar_lea.hbm %s1250_s1, %s729_s21  ;;  %s210_s29 = sshll.u32 %s200_s28, 4  ;;  %s211_s29 = int_to_ptr.vmem [resolvable:$true] %s210_s29 }
  0x23   : > { %s197_s4 = scalar_lea.sflag [#allocation7], %s1020_s25  ;;  %s841_s8 = scalar_lea.vmem %s211_s29, 16384 }
  0x24   : > { %p842_p8 = scmp.ne.s32.totalorder %s211_s29, %s841_s8  ;;  %s941_s30 = smov [#allocation6]  }
  0x25   : > { %s846_s5 = sshll.u32 %s941_s30, 4  ;;  %s847_s5 = int_to_ptr.vmem [resolvable:$false] %s846_s5 }
  0x26   : > { %p844_p13 = pnand %p842_p8, %p802_p12  ;;  %s848_s7 = scalar_lea.vmem %s847_s5, 32768 }
  0x27   : > { %p849_p10 = scmp.lt.s32.totalorder %s211_s29, %s847_s5  ;;  %p850_p11 = scmp.lt.s32.totalorder %s848_s7, %s841_s8 }
  0x28   : > { %p845_p0 = pneg %p844_p13 }
  0x29   : > { %p851_p1 = por %p850_p11, %p849_p10 }
  0x2b   : > { %p852_p2 = pnand %p851_p1, %p845_p0 }
  0x2d   : > { %855 = shalt.err (!%p852_p2)
}
  0x2e   : > { %s942_s9 = smov 256   ;;  %s943_s10 = smov 16  }
  0x2f   : > { %744 = dma.hbm_to_vmem [thread:$0]  (!%p1029_p9), %s209_s27, 16384, %s211_s29, %s197_s4, %s942_s9, %s942_s9, %s943_s10  }
  0x30   : > { %222 = sbr.rel (%p1047_p6) target bundleno = 362 (0x16a), region = 32  ;;  %s224_s25 = sand.u32 (!%p1047_p6), 1, %s922_s13  }
  0x31   : > { %s719_s11 = sshll.u32 (!%p1047_p6), %s224_s25, 5  ;;  %s225_s20 = scalar_lea.sflag (!%p1047_p6), [#allocation4], %s224_s25 }
  0x32   : > { %s1065_s21 = scalar_lea.vmem (!%p1047_p6), [#allocation3], %s719_s11 }
  0x35   : > { %905 = dma.done.wait (%p1011_p7), %s225_s20, 512  }
  0x36   : > { %907 = vsyncadd (%p1011_p7), %s225_s20, 4294966784  ;;  %s720_s22 = sshll.u32 %s224_s25, 10  ;;  %s234_s26 = scalar_lea.sflag [#allocation7], %s224_s25 }
  0x37   : > { %s1071_s6 = scalar_lea.vmem [#allocation6], %s720_s22 }
  0x38   : > { %909 = dma.done.wait (%p1011_p7), %s234_s26, 16384  }
  0x39   : > { %911 = vsyncadd (%p1011_p7), %s234_s26, 4294950912  ;;  %p721_p9 = scmp.ne.s32.totalorder %s930_s15, 0 }
  0x3b   : > { %276 = sbr.rel (%p721_p9) target bundleno = 66 (0x42), region = 44 }
  0x40   : > { %v944_v0 = vmov 0.0  }
  0x41   : > { %277 = vst [vmem:[#allocation2] sm:$0xff] %v944_v0  ;;  %278 = vst [vmem:[#allocation2 + $0x8] sm:$0xff] %v944_v0 }
  0x42 PF: > { %v316_v1 = vld [vmem:[%s1071_s6 + $0xf8] sm:$0xff]  ;;  %v315_v3 = vld [vmem:[%s1071_s6 + $0xf0] sm:$0xff]  ;;  %v314_v5 = vld [vmem:[%s1071_s6 + $0xe8] sm:$0xff]  ;;  %p722_p7 = scmp.ne.s32.totalorder %s930_s15, 1 }
  0x43   : > { %v380_v2 = vld [vmem:[%s1071_s6 + $0x2f8] sm:$0xff]  ;;  %413 = vmatprep.subr.mxu0 %v316_v1  ;;  %v379_v4 = vld [vmem:[%s1071_s6 + $0x2f0] sm:$0xff]  ;;  %v378_v6 = vld [vmem:[%s1071_s6 + $0x2e8] sm:$0xff] }
  0x44   : > { %484 = vmatprep.subr.mxu1 %v380_v2  ;;  %414 = vmatpush1.msra.mxu0 %v315_v3  ;;  %v313_v7 = vld [vmem:[%s1071_s6 + $0xe0] sm:$0xff]  ;;  %v312_v9 = vld [vmem:[%s1071_s6 + $0xd8] sm:$0xff]  ;;  %v311_v11 = vld [vmem:[%s1071_s6 + $0xd0] sm:$0xff] }
  0x45   : > { %485 = vmatpush1.msra.mxu1 %v379_v4  ;;  %v377_v8 = vld [vmem:[%s1071_s6 + $0x2e0] sm:$0xff]  ;;  %415 = vmatprep.subr.mxu0 %v314_v5  ;;  %v376_v10 = vld [vmem:[%s1071_s6 + $0x2d8] sm:$0xff]  ;;  %v375_v12 = vld [vmem:[%s1071_s6 + $0x2d0] sm:$0xff] }
  0x46   : > { %486 = vmatprep.subr.mxu1 %v378_v6  ;;  %416 = vmatpush1.msra.mxu0 %v313_v7  ;;  %v310_v13 = vld [vmem:[%s1071_s6 + $0xc8] sm:$0xff]  ;;  %v309_v15 = vld [vmem:[%s1071_s6 + $0xc0] sm:$0xff]  ;;  %v308_v17 = vld [vmem:[%s1071_s6 + $0xb8] sm:$0xff] }
  0x47   : > { %487 = vmatpush1.msra.mxu1 %v377_v8  ;;  %v374_v14 = vld [vmem:[%s1071_s6 + $0x2c8] sm:$0xff]  ;;  %417 = vmatprep.subr.mxu0 %v312_v9  ;;  %v373_v16 = vld [vmem:[%s1071_s6 + $0x2c0] sm:$0xff]  ;;  %v372_v18 = vld [vmem:[%s1071_s6 + $0x2b8] sm:$0xff] }
  0x48   : > { %488 = vmatprep.subr.mxu1 %v376_v10  ;;  %418 = vmatpush1.msra.mxu0 %v311_v11  ;;  %v307_v19 = vld [vmem:[%s1071_s6 + $0xb0] sm:$0xff]  ;;  %v306_v21 = vld [vmem:[%s1071_s6 + $0xa8] sm:$0xff]  ;;  %v305_v23 = vld [vmem:[%s1071_s6 + $0xa0] sm:$0xff] }
  0x49   : > { %489 = vmatpush1.msra.mxu1 %v375_v12  ;;  %419 = vmatprep.subr.mxu0 %v310_v13  ;;  %v371_v20 = vld [vmem:[%s1071_s6 + $0x2b0] sm:$0xff]  ;;  %v370_v22 = vld [vmem:[%s1071_s6 + $0x2a8] sm:$0xff]  ;;  %v369_v24 = vld [vmem:[%s1071_s6 + $0x2a0] sm:$0xff] }
  0x4a   : > { %490 = vmatprep.subr.mxu1 %v374_v14  ;;  %420 = vmatpush1.msra.mxu0 %v309_v15  ;;  %v304_v25 = vld [vmem:[%s1071_s6 + $0x98] sm:$0xff]  ;;  %v303_v27 = vld [vmem:[%s1071_s6 + $0x90] sm:$0xff]  ;;  %v302_v29 = vld [vmem:[%s1071_s6 + $0x88] sm:$0xff] }
  0x4b   : > { %491 = vmatpush1.msra.mxu1 %v373_v16  ;;  %421 = vmatprep.subr.mxu0 %v308_v17  ;;  %v368_v26 = vld [vmem:[%s1071_s6 + $0x298] sm:$0xff]  ;;  %v367_v28 = vld [vmem:[%s1071_s6 + $0x290] sm:$0xff]  ;;  %v366_v30 = vld [vmem:[%s1071_s6 + $0x288] sm:$0xff] }
  0x4c   : > { %492 = vmatprep.subr.mxu1 %v372_v18  ;;  %422 = vmatpush1.msra.mxu0 %v307_v19  ;;  %v301_v31 = vld [vmem:[%s1071_s6 + $0x80] sm:$0xff]  ;;  %v300_v33 = vld [vmem:[%s1071_s6 + $0x78] sm:$0xff]  ;;  %v299_v35 = vld [vmem:[%s1071_s6 + $0x70] sm:$0xff] }
  0x4d   : > { %493 = vmatpush1.msra.mxu1 %v371_v20  ;;  %423 = vmatprep.subr.mxu0 %v306_v21  ;;  %v365_v32 = vld [vmem:[%s1071_s6 + $0x280] sm:$0xff]  ;;  %v364_v34 = vld [vmem:[%s1071_s6 + $0x278] sm:$0xff]  ;;  %v363_v36 = vld [vmem:[%s1071_s6 + $0x270] sm:$0xff] }
  0x4e   : > { %494 = vmatprep.subr.mxu1 %v370_v22  ;;  %424 = vmatpush1.msra.mxu0 %v305_v23  ;;  %v298_v37 = vld [vmem:[%s1071_s6 + $0x68] sm:$0xff]  ;;  %v297_v39 = vld [vmem:[%s1071_s6 + $0x60] sm:$0xff]  ;;  %v296_v41 = vld [vmem:[%s1071_s6 + $0x58] sm:$0xff] }
  0x4f   : > { %495 = vmatpush1.msra.mxu1 %v369_v24  ;;  %425 = vmatprep.subr.mxu0 %v304_v25  ;;  %v362_v38 = vld [vmem:[%s1071_s6 + $0x268] sm:$0xff]  ;;  %v361_v40 = vld [vmem:[%s1071_s6 + $0x260] sm:$0xff]  ;;  %v360_v42 = vld [vmem:[%s1071_s6 + $0x258] sm:$0xff] }
  0x50   : > { %496 = vmatprep.subr.mxu1 %v368_v26  ;;  %426 = vmatpush1.msra.mxu0 %v303_v27  ;;  %v295_v43 = vld [vmem:[%s1071_s6 + $0x50] sm:$0xff]  ;;  %v294_v45 = vld [vmem:[%s1071_s6 + $0x48] sm:$0xff]  ;;  %v293_v47 = vld [vmem:[%s1071_s6 + $0x40] sm:$0xff] }
  0x51   : > { %497 = vmatpush1.msra.mxu1 %v367_v28  ;;  %427 = vmatprep.subr.mxu0 %v302_v29  ;;  %v359_v44 = vld [vmem:[%s1071_s6 + $0x250] sm:$0xff]  ;;  %v358_v46 = vld [vmem:[%s1071_s6 + $0x248] sm:$0xff]  ;;  %v357_v48 = vld [vmem:[%s1071_s6 + $0x240] sm:$0xff] }
  0x52   : > { %498 = vmatprep.subr.mxu1 %v366_v30  ;;  %428 = vmatpush1.msra.mxu0 %v301_v31  ;;  %v292_v49 = vld [vmem:[%s1071_s6 + $0x38] sm:$0xff]  ;;  %v291_v51 = vld [vmem:[%s1071_s6 + $0x30] sm:$0xff]  ;;  %v290_v53 = vld [vmem:[%s1071_s6 + $0x28] sm:$0xff] }
  0x53   : > { %499 = vmatpush1.msra.mxu1 %v365_v32  ;;  %429 = vmatprep.subr.mxu0 %v300_v33  ;;  %v356_v50 = vld [vmem:[%s1071_s6 + $0x238] sm:$0xff]  ;;  %v355_v52 = vld [vmem:[%s1071_s6 + $0x230] sm:$0xff]  ;;  %v354_v54 = vld [vmem:[%s1071_s6 + $0x228] sm:$0xff] }
  0x54   : > { %500 = vmatprep.subr.mxu1 %v364_v34  ;;  %430 = vmatpush1.msra.mxu0 %v299_v35  ;;  %v289_v55 = vld [vmem:[%s1071_s6 + $0x20] sm:$0xff]  ;;  %v288_v57 = vld [vmem:[%s1071_s6 + $0x18] sm:$0xff]  ;;  %v287_v59 = vld [vmem:[%s1071_s6 + $0x10] sm:$0xff] }
  0x55   : > { %501 = vmatpush1.msra.mxu1 %v363_v36  ;;  %431 = vmatprep.subr.mxu0 %v298_v37  ;;  %v353_v56 = vld [vmem:[%s1071_s6 + $0x220] sm:$0xff]  ;;  %v352_v58 = vld [vmem:[%s1071_s6 + $0x218] sm:$0xff]  ;;  %v351_v60 = vld [vmem:[%s1071_s6 + $0x210] sm:$0xff] }
  0x56   : > { %502 = vmatprep.subr.mxu1 %v362_v38  ;;  %432 = vmatpush1.msra.mxu0 %v297_v39  ;;  %v286_v61 = vld [vmem:[%s1071_s6 + $0x8] sm:$0xff]  ;;  %v285_v63 = vld [vmem:[%s1071_s6] sm:$0xff]  ;;  %v348_v1 = vld [vmem:[%s1071_s6 + $0x1f8] sm:$0xff] }
  0x57   : > { %503 = vmatpush1.msra.mxu1 %v361_v40  ;;  %433 = vmatprep.subr.mxu0 %v296_v41  ;;  %v350_v62 = vld [vmem:[%s1071_s6 + $0x208] sm:$0xff]  ;;  %v349_v0 = vld [vmem:[%s1071_s6 + $0x200] sm:$0xff]  ;;  %v412_v2 = vld [vmem:[%s1071_s6 + $0x3f8] sm:$0xff] }
  0x58   : > { %504 = vmatprep.subr.mxu1 %v360_v42  ;;  %434 = vmatpush1.msra.mxu0 %v295_v43  ;;  %v347_v3 = vld [vmem:[%s1071_s6 + $0x1f0] sm:$0xff]  ;;  %v346_v5 = vld [vmem:[%s1071_s6 + $0x1e8] sm:$0xff]  ;;  %v345_v7 = vld [vmem:[%s1071_s6 + $0x1e0] sm:$0xff] }
  0x59   : > { %505 = vmatpush1.msra.mxu1 %v359_v44  ;;  %435 = vmatprep.subr.mxu0 %v294_v45  ;;  %v411_v4 = vld [vmem:[%s1071_s6 + $0x3f0] sm:$0xff]  ;;  %v410_v6 = vld [vmem:[%s1071_s6 + $0x3e8] sm:$0xff]  ;;  %v409_v8 = vld [vmem:[%s1071_s6 + $0x3e0] sm:$0xff] }
  0x5a   : > { %506 = vmatprep.subr.mxu1 %v358_v46  ;;  %436 = vmatpush1.msra.mxu0 %v293_v47  ;;  %v344_v9 = vld [vmem:[%s1071_s6 + $0x1d8] sm:$0xff]  ;;  %v343_v11 = vld [vmem:[%s1071_s6 + $0x1d0] sm:$0xff]  ;;  %v342_v13 = vld [vmem:[%s1071_s6 + $0x1c8] sm:$0xff] }
  0x5b   : > { %507 = vmatpush1.msra.mxu1 %v357_v48  ;;  %437 = vmatprep.subr.mxu0 %v292_v49  ;;  %v408_v10 = vld [vmem:[%s1071_s6 + $0x3d8] sm:$0xff]  ;;  %v407_v12 = vld [vmem:[%s1071_s6 + $0x3d0] sm:$0xff]  ;;  %v406_v14 = vld [vmem:[%s1071_s6 + $0x3c8] sm:$0xff] }
  0x5c   : > { %508 = vmatprep.subr.mxu1 %v356_v50  ;;  %438 = vmatpush1.msra.mxu0 %v291_v51  ;;  %v341_v15 = vld [vmem:[%s1071_s6 + $0x1c0] sm:$0xff]  ;;  %v340_v17 = vld [vmem:[%s1071_s6 + $0x1b8] sm:$0xff]  ;;  %v339_v19 = vld [vmem:[%s1071_s6 + $0x1b0] sm:$0xff] }
  0x5d   : > { %509 = vmatpush1.msra.mxu1 %v355_v52  ;;  %439 = vmatprep.subr.mxu0 %v290_v53  ;;  %v405_v16 = vld [vmem:[%s1071_s6 + $0x3c0] sm:$0xff]  ;;  %v404_v18 = vld [vmem:[%s1071_s6 + $0x3b8] sm:$0xff]  ;;  %v403_v20 = vld [vmem:[%s1071_s6 + $0x3b0] sm:$0xff] }
  0x5e   : > { %510 = vmatprep.subr.mxu1 %v354_v54  ;;  %440 = vmatpush1.msra.mxu0 %v289_v55  ;;  %v338_v21 = vld [vmem:[%s1071_s6 + $0x1a8] sm:$0xff]  ;;  %v337_v23 = vld [vmem:[%s1071_s6 + $0x1a0] sm:$0xff]  ;;  %v336_v25 = vld [vmem:[%s1071_s6 + $0x198] sm:$0xff] }
  0x5f   : > { %511 = vmatpush1.msra.mxu1 %v353_v56  ;;  %441 = vmatprep.subr.mxu0 %v288_v57  ;;  %v402_v22 = vld [vmem:[%s1071_s6 + $0x3a8] sm:$0xff]  ;;  %v401_v24 = vld [vmem:[%s1071_s6 + $0x3a0] sm:$0xff]  ;;  %v400_v26 = vld [vmem:[%s1071_s6 + $0x398] sm:$0xff] }
  0x60   : > { %512 = vmatprep.subr.mxu1 %v352_v58  ;;  %442 = vmatpush1.msra.mxu0 %v287_v59  ;;  %v335_v27 = vld [vmem:[%s1071_s6 + $0x190] sm:$0xff]  ;;  %v334_v29 = vld [vmem:[%s1071_s6 + $0x188] sm:$0xff]  ;;  %v333_v31 = vld [vmem:[%s1071_s6 + $0x180] sm:$0xff] }
  0x61   : > { %513 = vmatpush1.msra.mxu1 %v351_v60  ;;  %443 = vmatprep.subr.mxu0 %v286_v61  ;;  %v399_v28 = vld [vmem:[%s1071_s6 + $0x390] sm:$0xff]  ;;  %v398_v30 = vld [vmem:[%s1071_s6 + $0x388] sm:$0xff]  ;;  %v397_v32 = vld [vmem:[%s1071_s6 + $0x380] sm:$0xff] }
  0x62   : > { %514 = vmatprep.subr.mxu1 %v350_v62  ;;  %444 = vmatpush1.msra.mxu0 %v285_v63  ;;  %v332_v33 = vld [vmem:[%s1071_s6 + $0x178] sm:$0xff]  ;;  %v331_v35 = vld [vmem:[%s1071_s6 + $0x170] sm:$0xff]  ;;  %v330_v37 = vld [vmem:[%s1071_s6 + $0x168] sm:$0xff] }
  0x63   : > { %515 = vmatpush1.msra.mxu1 %v349_v0  ;;  %445 = vmatprep.subr.mxu0 %v348_v1  ;;  %v396_v34 = vld [vmem:[%s1071_s6 + $0x378] sm:$0xff]  ;;  %v395_v36 = vld [vmem:[%s1071_s6 + $0x370] sm:$0xff]  ;;  %v394_v38 = vld [vmem:[%s1071_s6 + $0x368] sm:$0xff] }
  0x64   : > { %516 = vmatprep.subr.mxu1 %v412_v2  ;;  %446 = vmatpush2.msra.mxu0 %v347_v3  ;;  %v329_v39 = vld [vmem:[%s1071_s6 + $0x160] sm:$0xff]  ;;  %v328_v41 = vld [vmem:[%s1071_s6 + $0x158] sm:$0xff]  ;;  %v327_v43 = vld [vmem:[%s1071_s6 + $0x150] sm:$0xff] }
  0x65   : > { %517 = vmatpush2.msra.mxu1 %v411_v4  ;;  %447 = vmatprep.subr.mxu0 %v346_v5  ;;  %v393_v40 = vld [vmem:[%s1071_s6 + $0x360] sm:$0xff]  ;;  %v392_v42 = vld [vmem:[%s1071_s6 + $0x358] sm:$0xff]  ;;  %v391_v44 = vld [vmem:[%s1071_s6 + $0x350] sm:$0xff] }
  0x66   : > { %518 = vmatprep.subr.mxu1 %v410_v6  ;;  %448 = vmatpush2.msra.mxu0 %v345_v7  ;;  %v326_v45 = vld [vmem:[%s1071_s6 + $0x148] sm:$0xff]  ;;  %v325_v47 = vld [vmem:[%s1071_s6 + $0x140] sm:$0xff]  ;;  %v324_v49 = vld [vmem:[%s1071_s6 + $0x138] sm:$0xff] }
  0x67   : > { %519 = vmatpush2.msra.mxu1 %v409_v8  ;;  %449 = vmatprep.subr.mxu0 %v344_v9  ;;  %v390_v46 = vld [vmem:[%s1071_s6 + $0x348] sm:$0xff]  ;;  %v389_v48 = vld [vmem:[%s1071_s6 + $0x340] sm:$0xff]  ;;  %v388_v50 = vld [vmem:[%s1071_s6 + $0x338] sm:$0xff] }
  0x68   : > { %520 = vmatprep.subr.mxu1 %v408_v10  ;;  %450 = vmatpush2.msra.mxu0 %v343_v11  ;;  %v323_v51 = vld [vmem:[%s1071_s6 + $0x130] sm:$0xff]  ;;  %v322_v53 = vld [vmem:[%s1071_s6 + $0x128] sm:$0xff]  ;;  %v321_v55 = vld [vmem:[%s1071_s6 + $0x120] sm:$0xff] }
  0x69   : > { %521 = vmatpush2.msra.mxu1 %v407_v12  ;;  %451 = vmatprep.subr.mxu0 %v342_v13  ;;  %v387_v52 = vld [vmem:[%s1071_s6 + $0x330] sm:$0xff]  ;;  %v386_v54 = vld [vmem:[%s1071_s6 + $0x328] sm:$0xff]  ;;  %v385_v56 = vld [vmem:[%s1071_s6 + $0x320] sm:$0xff] }
  0x6a   : > { %522 = vmatprep.subr.mxu1 %v406_v14  ;;  %452 = vmatpush2.msra.mxu0 %v341_v15  ;;  %v320_v57 = vld [vmem:[%s1071_s6 + $0x118] sm:$0xff]  ;;  %v319_v59 = vld [vmem:[%s1071_s6 + $0x110] sm:$0xff]  ;;  %v318_v61 = vld [vmem:[%s1071_s6 + $0x108] sm:$0xff] }
  0x6b   : > { %523 = vmatpush2.msra.mxu1 %v405_v16  ;;  %453 = vmatprep.subr.mxu0 %v340_v17  ;;  %v384_v58 = vld [vmem:[%s1071_s6 + $0x318] sm:$0xff]  ;;  %v383_v60 = vld [vmem:[%s1071_s6 + $0x310] sm:$0xff]  ;;  %v382_v62 = vld [vmem:[%s1071_s6 + $0x308] sm:$0xff] }
  0x6c   : > { %524 = vmatprep.subr.mxu1 %v404_v18  ;;  %454 = vmatpush2.msra.mxu0 %v339_v19  ;;  %v317_v63 = vld [vmem:[%s1071_s6 + $0x100] sm:$0xff]  ;;  %v282_v0 = vld [vmem:[%s1065_s21 + $0x8] sm:$0xff]  ;;  %v284_v2 = vld [vmem:[%s1065_s21 + $0x18] sm:$0xff] }
  0x6d   : > { %525 = vmatpush2.msra.mxu1 %v403_v20  ;;  %455 = vmatprep.subr.mxu0 %v338_v21  ;;  %v381_v1 = vld [vmem:[%s1071_s6 + $0x300] sm:$0xff]  ;;  %v283_v4 = vld [vmem:[%s1065_s21 + $0x10] sm:$0xff]  ;;  %v280_v10 = vld [vmem:[#allocation2 + $0x8] sm:$0xff] }
  0x6e   : > { %526 = vmatprep.subr.mxu1 %v402_v22  ;;  %456 = vmatpush2.msra.mxu0 %v337_v23  ;;  %v281_v3 = vld [vmem:[%s1065_s21] sm:$0xff]  ;;  %v279_v6 = vld [vmem:[#allocation2] sm:$0xff] }
  0x6f   : > { %527 = vmatpush2.msra.mxu1 %v401_v24  ;;  %457 = vmatprep.subr.mxu0 %v336_v25 }
  0x70   : > { %528 = vmatprep.subr.mxu1 %v400_v26  ;;  %458 = vmatpush2.msra.mxu0 %v335_v27 }
  0x71   : > { %529 = vmatpush2.msra.mxu1 %v399_v28  ;;  %459 = vmatprep.subr.mxu0 %v334_v29 }
  0x72   : > { %530 = vmatprep.subr.mxu1 %v398_v30  ;;  %460 = vmatpush2.msra.mxu0 %v333_v31 }
  0x73   : > { %531 = vmatpush2.msra.mxu1 %v397_v32  ;;  %461 = vmatprep.subr.mxu0 %v332_v33 }
  0x74   : > { %532 = vmatprep.subr.mxu1 %v396_v34  ;;  %462 = vmatpush2.msra.mxu0 %v331_v35 }
  0x75   : > { %533 = vmatpush2.msra.mxu1 %v395_v36  ;;  %463 = vmatprep.subr.mxu0 %v330_v37 }
  0x76   : > { %534 = vmatprep.subr.mxu1 %v394_v38  ;;  %464 = vmatpush2.msra.mxu0 %v329_v39 }
  0x77   : > { %535 = vmatpush2.msra.mxu1 %v393_v40  ;;  %465 = vmatprep.subr.mxu0 %v328_v41 }
  0x78   : > { %536 = vmatprep.subr.mxu1 %v392_v42  ;;  %466 = vmatpush2.msra.mxu0 %v327_v43 }
  0x79   : > { %537 = vmatpush2.msra.mxu1 %v391_v44  ;;  %467 = vmatprep.subr.mxu0 %v326_v45 }
  0x7a   : > { %538 = vmatprep.subr.mxu1 %v390_v46  ;;  %468 = vmatpush2.msra.mxu0 %v325_v47 }
  0x7b   : > { %539 = vmatpush2.msra.mxu1 %v389_v48  ;;  %469 = vmatprep.subr.mxu0 %v324_v49 }
  0x7c   : > { %540 = vmatprep.subr.mxu1 %v388_v50  ;;  %470 = vmatpush2.msra.mxu0 %v323_v51 }
  0x7d   : > { %541 = vmatpush2.msra.mxu1 %v387_v52  ;;  %471 = vmatprep.subr.mxu0 %v322_v53 }
  0x7e   : > { %542 = vmatprep.subr.mxu1 %v386_v54  ;;  %472 = vmatpush2.msra.mxu0 %v321_v55 }
  0x7f   : > { %543 = vmatpush2.msra.mxu1 %v385_v56  ;;  %473 = vmatprep.subr.mxu0 %v320_v57 }
  0x80   : > { %544 = vmatprep.subr.mxu1 %v384_v58  ;;  %474 = vmatpush2.msra.mxu0 %v319_v59 }
  0x81   : > { %545 = vmatpush2.msra.mxu1 %v383_v60  ;;  %475 = vmatprep.subr.mxu0 %v318_v61 }
  0x82   : > { %546 = vmatprep.subr.mxu1 %v382_v62  ;;  %476 = vmatpush2.msra.mxu0 %v317_v63 }
  0x83   : > { %477 = vmatprep.mubr.f32.mxu0 %v282_v0  ;;  %547 = vmatpush2.msra.mxu1 %v381_v1 }
  0x84   : > { %548 = vmatprep.mubr.f32.mxu1 %v284_v2  ;;  %478 = vmatmul.mubr.f32.vlgmr.msra.gmra.mxu0 %v281_v3 }
  0x85   : > { %549 = vmatmul.mubr.f32.vlgmr.msra.gmra.mxu1 %v283_v4 }
 0x144   : > { %v479_v5 = vpop.f32.mrf.mxu0 }
 0x145   : > { %v550_v7 = vpop.f32.mrf.mxu1 }
 0x146   : > { %v551_v8 = vadd.f32 %v550_v7, %v479_v5  ;;  %v481_v9 = vpop.f32.mrf.mxu0 }
 0x147   : > { %v552_v11 = vpop.f32.mrf.mxu1 }
 0x148   : > { %v555_v12 = vadd.f32 %v551_v8, %v279_v6  ;;  %v553_v13 = vadd.f32 %v552_v11, %v481_v9  ;;  %562 = sbr.rel (%p722_p7) target bundleno = 347 (0x15b), region = 48 }
 0x14a   : > { %557 = vst [vmem:[#allocation2] sm:$0xff] %v555_v12  ;;  %v556_v14 = vadd.f32 %v553_v13, %v280_v10 }
 0x14c   : > { %558 = vst [vmem:[#allocation2 + $0x8] sm:$0xff] %v556_v14 }
 0x14d   : > { %v567_v15 = vlaneseq  ;;  %v565_v17 = vld [vmem:[%s1251_s2] sm:$0x3] }
 0x14f   : > { %v568_v16 = vshrl.u32 %v567_v15, 7 }
 0x151   : > { %v569_v18 = vsub.s32 0, %v568_v16  ;;  %v573_v19 = vsub.s32 1, %v568_v16  ;;  %v563_v20 = vld [vmem:[#allocation2] sm:$0xff] }
 0x153   : > { %v564_v21 = vld [vmem:[#allocation2 + $0x8] sm:$0xff]  ;;  %v570_v22 = vrot.slane %v565_v17, %v569_v18  ;;  %v574_v23 = vrot.slane %v565_v17, %v573_v19 }
 0x155   : > { %v577_v24 = vadd.f32 %v570_v22, %v563_v20  ;;  %v578_v25 = vadd.f32 %v574_v23, %v564_v21 }
 0x157   : > { %vm579_vm0 = vcmp.ge.f32.partialorder %v577_v24, 0.0  ;;  %v581_v26 = vmul.f32 0.01, %v577_v24  ;;  %vm580_vm1 = vcmp.ge.f32.partialorder %v578_v25, 0.0  ;;  %v582_v27 = vmul.f32 0.01, %v578_v25 }
 0x159   : > { %v583_v28 = vsel %vm579_vm0, %v577_v24, %v581_v26  ;;  %v584_v29 = vsel %vm580_vm1, %v578_v25, %v582_v27 }
 0x15a   : > { %585 = vst [vmem:[#allocation8] sm:$0xff] %v583_v28  ;;  %586 = vst [vmem:[#allocation8 + $0x8] sm:$0xff] %v584_v29 }
 0x15b PF: > { %p1216_p12 = scmp.eq.s32.totalorder %s707_s18, 1  ;;  %s945_s27 = smov [#allocation8]  }
 0x15c   : > { %s599_s28 = sshll.u32 %s945_s27, 4  ;;  %s600_s28 = int_to_ptr.vmem [resolvable:$true] %s599_s28 }
 0x15d   : > { %s856_s29 = scalar_lea.vmem %s600_s28, 256  ;;  %p863_p6 = scmp.lt.s32.totalorder %s600_s28, %s600_s28 }
 0x15e   : > { %p857_p3 = scmp.ne.s32.totalorder %s600_s28, %s856_s29  ;;  %p864_p8 = scmp.lt.s32.totalorder %s856_s29, %s856_s29 }
 0x160   : > { %p858_p4 = pnand %p857_p3, %p1216_p12  ;;  %p865_p13 = por %p864_p8, %p863_p6 }
 0x162   : > { %p859_p5 = pneg %p858_p4 }
 0x164   : > { %p866_p0 = pnand %p865_p13, %p859_p5 }
 0x166   : > { %869 = shalt.err (!%p866_p0)
}
 0x167   : > { %735 = dma.vmem_to_hbm [thread:$0]  (%p1216_p12), %s600_s28, 256, %s1252_s3, [#allocation5]  }
 0x168   : > { %913 = dma.done.wait (%p1216_p12), [#allocation5], 256  }
 0x169   : > { %915 = vsyncadd (%p1216_p12), [#allocation5], 4294967040 }
 0x16a PF: > { %s20_s17 = sadd.s32 1, %s938_s17   ;;  %s1258_s12 = smov %s922_s13 }
 0x16b   : > { %p17_p10 = scmp.ge.s32.totalorder %s20_s17, 4   ;;  %s1259_s13 = smov %s926_s14 }
 0x16c   : > { %s1260_s14 = smov %s1017_s24  ;;  %s1261_s15 = smov %s934_s16 }
 0x16d   : > { %s1262_s16 = smov %s1264_s19  ;;  %19 = sbr.rel (!%p17_p10) target bundleno = 7 (0x7), region = 94 }
 0x172   :  { %612 = vsyncpa [#allocation4], 1 }
 0x173   :  { %614 = vsyncpa [#allocation4 + $0x1], 1 }
 0x174   :  { %615 = vsyncpa [#allocation7], 1 }
 0x175   :  { %617 = vsyncpa [#allocation7 + $0x1], 1 }
 0x176   :  { %618 = vsyncpa [#allocation5], 1 }
 0x177   :  { %620 = vsyncpa [#allocation5 + $0x1], 1 }

</bundles_post_ra>
